<compile_context>
chip_gen: v7x
topology: tpu7x:2x2x1
jax: 0.10.0
libtpu: 0.0.40
codegen_flags: <defaults>
</compile_context>

<pallas_src>
import functools
import math

import jax
import jax.numpy as jnp
from jax.experimental import pallas as pl
from jax.experimental.pallas import tpu as pltpu


_INV_SQRT2 = 1.0 / math.sqrt(2.0)
_M_ALIGN = 16  # bf16 sublane-packed tile height; keeps all bf16 blocks legal.


def _round_up(x, m):
    return ((x + m - 1) // m) * m


def _gelu_exact(x):
    # BERT's exact gelu: x * 0.5 * (1 + erf(x / sqrt(2)))
    return x * 0.5 * (1.0 + jax.lax.erf(x * _INV_SQRT2))


# --------------------------------------------------------------------------- #
# Kernel: BertLMPredictionHead (transform + tied-embedding decoder)
# --------------------------------------------------------------------------- #
def _mlm_head_kernel(x_ref, wt_ref, tparam_ref, dw_ref, db_ref, o_ref,
                     t_ref, *, eps):
    # Contract on the last dims of both operands (torch Linear layout),
    # avoiding any wrapper-side weight transpose.
    dn = (((1,), (1,)), ((), ()))

    @pl.when(pl.program_id(1) == 0)
    def _():
        # Dense [tm, H] @ [H, H]^T on the MXU (bf16 operands, f32 accumulation).
        h = jax.lax.dot_general(x_ref[...], wt_ref[...], dn,
                                preferred_element_type=jnp.float32)
        h = h + tparam_ref[0:1, :]                       # transform bias (f32)
        h = _gelu_exact(h)                               # exact erf-gelu
        # LayerNorm over the hidden dim, f32 statistics.
        mean = jnp.mean(h, axis=-1, keepdims=True)
        c = h - mean
        var = jnp.mean(c * c, axis=-1, keepdims=True)
        y = c * jax.lax.rsqrt(var + eps)
        y = y * tparam_ref[1:2, :] + tparam_ref[2:3, :]  # gamma, beta
        t_ref[...] = y.astype(t_ref.dtype)               # bf16 scratch for decoder

    # Decoder: [tm, H] @ [tile_v, H]^T + bias (tied embedding weights).
    logits = jax.lax.dot_general(t_ref[...], dw_ref[...], dn,
                                 preferred_element_type=jnp.float32)
    logits = logits + db_ref[...]
    o_ref[...] = logits.astype(o_ref.dtype)


def _mlm_prediction_head(seq_mh, transform_w, transform_b, ln_gamma, ln_beta,
                         embedding_weights, decoder_bias, *,
                         eps, tile_m, tile_v, logits_dtype):
    M, H = seq_mh.shape
    V = embedding_weights.shape[0]

    # ---- tile / padding selection ----------------------------------------
    tm = _round_up(min(tile_m, _round_up(M, _M_ALIGN)), _M_ALIGN)
    # v7x megacore: keep >= 2 row tiles when possible so the "parallel" M axis
    # can be sharded across both TensorCores (the V axis must stay sequential).
    if _round_up(M, tm) == tm and tm >= 2 * _M_ALIGN:
        tm = _round_up(tm // 2, _M_ALIGN)
    M_pad = _round_up(M, tm)

    tv = _round_up(min(tile_v, _round_up(V, 128)), 128)
    V_pad = _round_up(V, tv)

    grid_m = M_pad // tm
    grid_v = V_pad // tv

    # ---- operand preparation (bf16 matmul operands, f32 params) -----------
    x = seq_mh.astype(jnp.bfloat16)
    if M_pad != M:
        x = jnp.pad(x, ((0, M_pad - M), (0, 0)))

    wt = transform_w.astype(jnp.bfloat16)                    # [H, H] torch layout
    tparams = jnp.stack([transform_b, ln_gamma, ln_beta]).astype(jnp.float32)

    # Keep the embedding table in its native [V, H] layout; cast only if the
    # caller did not already hand us bf16 (store it persistently as bf16!).
    dw = embedding_weights
    if dw.dtype != jnp.bfloat16:
        dw = dw.astype(jnp.bfloat16)
    db = decoder_bias.astype(jnp.float32)
    if V_pad != V:
        dw = jnp.pad(dw, ((0, V_pad - V), (0, 0)))
        db = jnp.pad(db, (0, V_pad - V))
    db = db.reshape(1, V_pad)

    out_bytes = jnp.dtype(logits_dtype).itemsize

    # ---- VMEM budget: actual working set (+50% and a few MiB of headroom),
    # NOT the full physical VMEM of a v7x core. --------------------------------
    working = (2 * tm * H * 2            # x double-buffer (bf16)
               + 2 * H * H * 2           # transform weight (constant index)
               + 2 * 3 * H * 4           # bias/gamma/beta
               + 2 * tv * H * 2          # decoder weight tiles (bf16)
               + 2 * tv * 4              # decoder bias tile
               + 2 * tm * tv * out_bytes # output tiles
               + tm * H * 2)             # transform scratch
    vmem_limit = max(16 * 1024 * 1024, working * 3 // 2 + (4 << 20))

    cost = pl.CostEstimate(
        flops=2 * M_pad * H * H + 2 * M_pad * H * V_pad,
        transcendentals=M_pad * H,
        bytes_accessed=(M_pad * H * 2 + H * H * 2 + 3 * H * 4
                        + grid_m * (V_pad * H * 2 + V_pad * 4)
                        + M_pad * V_pad * out_bytes),
    )

    kernel = functools.partial(_mlm_head_kernel, eps=eps)
    out = pl.pallas_call(
        kernel,
        out_shape=jax.ShapeDtypeStruct((M_pad, V_pad), logits_dtype),
        grid_spec=pltpu.PrefetchScalarGridSpec(
            num_scalar_prefetch=0,
            grid=(grid_m, grid_v),
            in_specs=[
                pl.BlockSpec((tm, H),  lambda i, j: (i, 0)),   # activations
                pl.BlockSpec((H, H),   lambda i, j: (0, 0)),   # transform weight
                pl.BlockSpec((3, H),   lambda i, j: (0, 0)),   # bias/gamma/beta
                pl.BlockSpec((tv, H),  lambda i, j: (j, 0)),   # decoder weight tile
                pl.BlockSpec((1, tv),  lambda i, j: (0, j)),   # decoder bias tile
            ],
            out_specs=pl.BlockSpec((tm, tv), lambda i, j: (i, j)),
            scratch_shapes=[pltpu.VMEM((tm, H), jnp.bfloat16)],
        ),
        compiler_params=pltpu.CompilerParams(
            # V must stay "arbitrary": the pl.when(v==0) transform cache relies
            # on sequential V iteration within each row tile.
            dimension_semantics=("parallel", "arbitrary"),
            vmem_limit_bytes=int(vmem_limit)),
        cost_estimate=cost,
    )(x, wt, tparams, dw, db)

    if M_pad != M or V_pad != V:
        out = out[:M, :V]
    return out


# --------------------------------------------------------------------------- #
# seq_relationship head (Linear(H, 2)) — plain XLA per perf review: a
# [B,H]x[H,2] matmul is microseconds of work; a pallas_call is pure overhead.
# --------------------------------------------------------------------------- #
def _seq_relationship_head(pooled, seq_rel_w, seq_rel_b):
    y = (jnp.dot(pooled.astype(jnp.float32), seq_rel_w.T.astype(jnp.float32))
         + seq_rel_b.astype(jnp.float32))
    return y.astype(pooled.dtype)


# --------------------------------------------------------------------------- #
# Module wrapper: ZenPreTrainingHeads.forward
# --------------------------------------------------------------------------- #
def zen_pretraining_heads(sequence_output, pooled_output, *,
                          transform_w, transform_b, ln_gamma, ln_beta,
                          embedding_weights, decoder_bias,
                          seq_rel_w, seq_rel_b,
                          eps=1e-12, tile_m=512, tile_v=1024,
                          logits_dtype=jnp.bfloat16):
    """sequence_output: [B, S, H]; pooled_output: [B, H].

    transform_w: [H, H] (torch nn.Linear layout), embedding_weights: [V, H],
    seq_rel_w: [2, H].  Returns (prediction_scores [B,S,V], seq_relationship [B,2]).
    prediction_scores are emitted in `logits_dtype` (bf16 by default).
    """
    B, S, H = sequence_output.shape
    seq_mh = sequence_output.reshape(B * S, H)
    scores = _mlm_prediction_head(
        seq_mh, transform_w, transform_b, ln_gamma, ln_beta,
        embedding_weights, decoder_bias,
        eps=eps, tile_m=tile_m, tile_v=tile_v, logits_dtype=logits_dtype)
    prediction_scores = scores.reshape(B, S, -1)
    seq_relationship_score = _seq_relationship_head(pooled_output, seq_rel_w, seq_rel_b)
    return prediction_scores, seq_relationship_score


# --------------------------------------------------------------------------- #
# Pure-JAX reference (mirrors the kernel's bf16-matmul / f32-elementwise math)
# --------------------------------------------------------------------------- #
def _reference(sequence_output, pooled_output, transform_w, transform_b,
               ln_gamma, ln_beta, embedding_weights, decoder_bias,
               seq_rel_w, seq_rel_b, eps=1e-12):
    B, S, H = sequence_output.shape
    x = sequence_output.reshape(B * S, H)
    dn = (((1,), (1,)), ((), ()))
    h = jax.lax.dot_general(x.astype(jnp.bfloat16), transform_w.astype(jnp.bfloat16),
                            dn, preferred_element_type=jnp.float32) + transform_b
    h = h * 0.5 * (1.0 + jax.lax.erf(h * _INV_SQRT2))
    mean = jnp.mean(h, axis=-1, keepdims=True)
    var = jnp.mean((h - mean) ** 2, axis=-1, keepdims=True)
    y = (h - mean) * jax.lax.rsqrt(var + eps) * ln_gamma + ln_beta
    y = y.astype(jnp.bfloat16)
    scores = jax.lax.dot_general(y, embedding_weights.astype(jnp.bfloat16),
                                 dn, preferred_element_type=jnp.float32) + decoder_bias
    rel = (pooled_output.astype(jnp.float32) @ seq_rel_w.T.astype(jnp.float32)
           + seq_rel_b)
    return scores.reshape(B, S, -1), rel


if __name__ == "__main__":
    # Small config: batch=2, seq=8, hidden=128, vocab=512.
    batch, seq_len = 2, 8
    hidden_size, vocab_size = 128, 512
    eps = 1e-12

    key = jax.random.PRNGKey(0)
    ks = jax.random.split(key, 10)

    sequence_output = jax.random.normal(ks[0], (batch, seq_len, hidden_size), jnp.float32)
    pooled_output = jax.random.normal(ks[1], (batch, hidden_size), jnp.float32)

    transform_w = jax.random.normal(ks[2], (hidden_size, hidden_size), jnp.float32) * 0.02
    transform_b = jax.random.normal(ks[3], (hidden_size,), jnp.float32) * 0.02
    ln_gamma = 1.0 + 0.1 * jax.random.normal(ks[4], (hidden_size,), jnp.float32)
    ln_beta = 0.1 * jax.random.normal(ks[5], (hidden_size,), jnp.float32)
    embedding_weights = jax.random.normal(ks[6], (vocab_size, hidden_size), jnp.float32) * 0.02
    decoder_bias = jax.random.normal(ks[7], (vocab_size,), jnp.float32) * 0.02
    seq_rel_w = jax.random.normal(ks[8], (2, hidden_size), jnp.float32) * 0.02
    seq_rel_b = jax.random.normal(ks[9], (2,), jnp.float32) * 0.02

    pred, rel = zen_pretraining_heads(
        sequence_output, pooled_output,
        transform_w=transform_w, transform_b=transform_b,
        ln_gamma=ln_gamma, ln_beta=ln_beta,
        embedding_weights=embedding_weights, decoder_bias=decoder_bias,
        seq_rel_w=seq_rel_w, seq_rel_b=seq_rel_b,
        eps=eps)   # default tile_m=512 / tile_v=1024 auto-clamp to the tiny demo
    pred, rel = jax.block_until_ready((pred, rel))

    ref_pred, ref_rel = _reference(
        sequence_output, pooled_output, transform_w, transform_b,
        ln_gamma, ln_beta, embedding_weights, decoder_bias,
        seq_rel_w, seq_rel_b, eps=eps)

    assert pred.shape == (batch, seq_len, vocab_size)
    assert pred.dtype == jnp.bfloat16
    assert rel.shape == (batch, 2)

    ref_pred_bf16 = ref_pred.astype(jnp.bfloat16).astype(jnp.float32)
    assert jnp.allclose(pred.astype(jnp.float32), ref_pred_bf16,
                        atol=2e-2, rtol=2e-2), "MLM head mismatch"
    assert jnp.allclose(rel.astype(jnp.float32), ref_rel,
                        atol=1e-4, rtol=1e-4), "seq-rel head mismatch"

    print("KERNEL_OK")
</pallas_src>

<mosaic_0001>
module attributes {stable_mosaic.version = 11 : i64} {
  func.func @_mlm_head_kernel(%arg0: i32, %arg1: i32, %arg2: memref<16x128xbf16, #tpu.memory_space<vmem>>, %arg3: memref<128x128xbf16, #tpu.memory_space<vmem>>, %arg4: memref<3x128xf32, #tpu.memory_space<vmem>>, %arg5: memref<512x128xbf16, #tpu.memory_space<vmem>>, %arg6: memref<1x512xf32, #tpu.memory_space<vmem>>, %arg7: memref<16x512xbf16, #tpu.memory_space<vmem>>, %arg8: memref<16x128xbf16, #tpu.memory_space<vmem>>) attributes {dimension_semantics = [#tpu.dimension_semantics<parallel>, #tpu.dimension_semantics<arbitrary>], iteration_bounds = array<i64: 1, 1>, scalar_prefetch = 0 : i64, scratch_operands = 1 : i64, tpu.core_type = #tpu.core_type<tc>, window_params = [{transform_indices = @transform_0, window_bounds = array<i64: 16, 128>}, {pipeline_mode = #tpu.pipeline_mode<synchronous>, transform_indices = @transform_1, window_bounds = array<i64: 128, 128>}, {pipeline_mode = #tpu.pipeline_mode<synchronous>, transform_indices = @transform_2, window_bounds = array<i64: 3, 128>}, {transform_indices = @transform_3, window_bounds = array<i64: 512, 128>}, {transform_indices = @transform_4, window_bounds = array<i64: 1, 512>}, {transform_indices = @transform_5, window_bounds = array<i64: 16, 512>}]} {
    %c0_i32 = arith.constant 0 : i32
    %0 = arith.cmpi eq, %arg1, %c0_i32 : i32
    %1 = arith.extui %0 : i1 to i32
    %c0_i32_0 = arith.constant 0 : i32
    %2 = arith.cmpi ne, %1, %c0_i32_0 : i32
    scf.if %2 {
      %c0_8 = arith.constant 0 : index
      %c0_9 = arith.constant 0 : index
      %11 = vector.load %arg2[%c0_8, %c0_9] : memref<16x128xbf16, #tpu.memory_space<vmem>>, vector<16x128xbf16>
      %c0_10 = arith.constant 0 : index
      %c0_11 = arith.constant 0 : index
      %12 = vector.load %arg3[%c0_10, %c0_11] : memref<128x128xbf16, #tpu.memory_space<vmem>>, vector<128x128xbf16>
      %cst_12 = arith.constant dense<0.000000e+00> : vector<16x128xf32>
      %13 = tpu.matmul %11, %12, %cst_12 {dimension_numbers = #tpu.dot_dimension_numbers<[1], [1], [0], [0], [0, 0, 1, 0], [], []>} : vector<16x128xbf16>, vector<128x128xbf16>, vector<16x128xf32> -> vector<16x128xf32>
      %c0_13 = arith.constant 0 : index
      %c0_14 = arith.constant 0 : index
      %14 = vector.load %arg4[%c0_13, %c0_14] : memref<3x128xf32, #tpu.memory_space<vmem>>, vector<1x128xf32>
      %15 = vector.broadcast %14 : vector<1x128xf32> to vector<16x128xf32>
      %16 = arith.addf %13, %15 : vector<16x128xf32>
      %cst_15 = arith.constant 5.000000e-01 : f32
      %17 = vector.broadcast %cst_15 : f32 to vector<16x128xf32>
      %18 = arith.mulf %16, %17 : vector<16x128xf32>
      %cst_16 = arith.constant 0.707106769 : f32
      %19 = vector.broadcast %cst_16 : f32 to vector<16x128xf32>
      %20 = arith.mulf %16, %19 : vector<16x128xf32>
      %21 = math.erf %20 : vector<16x128xf32>
      %cst_17 = arith.constant 1.000000e+00 : f32
      %22 = vector.broadcast %cst_17 : f32 to vector<16x128xf32>
      %23 = arith.addf %22, %21 : vector<16x128xf32>
      %24 = arith.mulf %18, %23 : vector<16x128xf32>
      %cst_18 = arith.constant dense<0.000000e+00> : vector<16xf32>
      %25 = vector.multi_reduction <add>, %24, %cst_18 [1] : vector<16x128xf32> to vector<16xf32>
      %26 = vector.shape_cast %25 : vector<16xf32> to vector<16x1xf32>
      %cst_19 = arith.constant 1.280000e+02 : f32
      %27 = vector.broadcast %cst_19 : f32 to vector<16x1xf32>
      %28 = arith.divf %26, %27 : vector<16x1xf32>
      %29 = vector.broadcast %28 : vector<16x1xf32> to vector<16x128xf32>
      %30 = arith.subf %24, %29 : vector<16x128xf32>
      %31 = arith.mulf %30, %30 : vector<16x128xf32>
      %cst_20 = arith.constant dense<0.000000e+00> : vector<16xf32>
      %32 = vector.multi_reduction <add>, %31, %cst_20 [1] : vector<16x128xf32> to vector<16xf32>
      %33 = vector.shape_cast %32 : vector<16xf32> to vector<16x1xf32>
      %cst_21 = arith.constant 1.280000e+02 : f32
      %34 = vector.broadcast %cst_21 : f32 to vector<16x1xf32>
      %35 = arith.divf %33, %34 : vector<16x1xf32>
      %cst_22 = arith.constant 9.99999996E-13 : f32
      %36 = vector.broadcast %cst_22 : f32 to vector<16x1xf32>
      %37 = arith.addf %35, %36 : vector<16x1xf32>
      %38 = math.rsqrt %37 : vector<16x1xf32>
      %39 = vector.broadcast %38 : vector<16x1xf32> to vector<16x128xf32>
      %40 = arith.mulf %30, %39 : vector<16x128xf32>
      %c1 = arith.constant 1 : index
      %c0_23 = arith.constant 0 : index
      %41 = vector.load %arg4[%c1, %c0_23] : memref<3x128xf32, #tpu.memory_space<vmem>>, vector<1x128xf32>
      %42 = vector.broadcast %41 : vector<1x128xf32> to vector<16x128xf32>
      %43 = arith.mulf %40, %42 : vector<16x128xf32>
      %c2 = arith.constant 2 : index
      %c0_24 = arith.constant 0 : index
      %44 = vector.load %arg4[%c2, %c0_24] : memref<3x128xf32, #tpu.memory_space<vmem>>, vector<1x128xf32>
      %45 = vector.broadcast %44 : vector<1x128xf32> to vector<16x128xf32>
      %46 = arith.addf %43, %45 : vector<16x128xf32>
      %47 = arith.truncf %46 : vector<16x128xf32> to vector<16x128xbf16>
      %c0_25 = arith.constant 0 : index
      %c0_26 = arith.constant 0 : index
      %48 = vector.load %arg8[%c0_25, %c0_26] : memref<16x128xbf16, #tpu.memory_space<vmem>>, vector<16x128xbf16>
      tpu.vector_store %arg8[%c0_25, %c0_26], %47 {strides = array<i32>} : memref<16x128xbf16, #tpu.memory_space<vmem>>, vector<16x128xbf16>,
    } else {
    }
    %c0 = arith.constant 0 : index
    %c0_1 = arith.constant 0 : index
    %3 = vector.load %arg8[%c0, %c0_1] : memref<16x128xbf16, #tpu.memory_space<vmem>>, vector<16x128xbf16>
    %c0_2 = arith.constant 0 : index
    %c0_3 = arith.constant 0 : index
    %4 = vector.load %arg5[%c0_2, %c0_3] : memref<512x128xbf16, #tpu.memory_space<vmem>>, vector<512x128xbf16>
    %cst = arith.constant dense<0.000000e+00> : vector<16x512xf32>
    %5 = tpu.matmul %3, %4, %cst {dimension_numbers = #tpu.dot_dimension_numbers<[1], [1], [0], [0], [0, 0, 1, 0], [], []>} : vector<16x128xbf16>, vector<512x128xbf16>, vector<16x512xf32> -> vector<16x512xf32>
    %c0_4 = arith.constant 0 : index
    %c0_5 = arith.constant 0 : index
    %6 = vector.load %arg6[%c0_4, %c0_5] : memref<1x512xf32, #tpu.memory_space<vmem>>, vector<1x512xf32>
    %7 = vector.broadcast %6 : vector<1x512xf32> to vector<16x512xf32>
    %8 = arith.addf %5, %7 : vector<16x512xf32>
    %9 = arith.truncf %8 : vector<16x512xf32> to vector<16x512xbf16>
    %c0_6 = arith.constant 0 : index
    %c0_7 = arith.constant 0 : index
    %10 = vector.load %arg7[%c0_6, %c0_7] : memref<16x512xbf16, #tpu.memory_space<vmem>>, vector<16x512xbf16>
    tpu.vector_store %arg7[%c0_6, %c0_7], %9 {strides = array<i32>} : memref<16x512xbf16, #tpu.memory_space<vmem>>, vector<16x512xbf16>,
    return
  }
  func.func @transform_0(%arg0: i32, %arg1: i32) -> (i32, i32) {
    %c0_i32 = arith.constant 0 : i32
    %c0_i32_0 = arith.constant 0 : i32
    return %arg0, %c0_i32 : i32, i32
  }
  func.func @transform_1(%arg0: i32, %arg1: i32) -> (i32, i32) {
    %c0_i32 = arith.constant 0 : i32
    %c0_i32_0 = arith.constant 0 : i32
    %c0_i32_1 = arith.constant 0 : i32
    return %c0_i32, %c0_i32_0 : i32, i32
  }
  func.func @transform_2(%arg0: i32, %arg1: i32) -> (i32, i32) {
    %c0_i32 = arith.constant 0 : i32
    %c0_i32_0 = arith.constant 0 : i32
    %c0_i32_1 = arith.constant 0 : i32
    return %c0_i32, %c0_i32_0 : i32, i32
  }
  func.func @transform_3(%arg0: i32, %arg1: i32) -> (i32, i32) {
    %c0_i32 = arith.constant 0 : i32
    %c0_i32_0 = arith.constant 0 : i32
    return %arg1, %c0_i32 : i32, i32
  }
  func.func @transform_4(%arg0: i32, %arg1: i32) -> (i32, i32) {
    %c0_i32 = arith.constant 0 : i32
    %c0_i32_0 = arith.constant 0 : i32
    return %c0_i32, %arg1 : i32, i32
  }
  func.func @transform_5(%arg0: i32, %arg1: i32) -> (i32, i32) {
    %c0_i32 = arith.constant 0 : i32
    return %arg0, %arg1 : i32, i32
  }
}

</mosaic_0001>

<bundles_post_ra>
// kernel: tpu_custom_call.1
= control target key start
LH: loop header
LB: loop body
LE: loop exit
PB: predicated region body
PF: predicated region fallthrough
CT: control target
= control target key end

     0   :  { %10 = vsyncpa [#allocation4], 0  ;;  %s1031_s0 = inlined_call_operand.hbm [shape: bf16[16,128], index: 0, kind: input, shape index: {}]   ;;  %s1032_s1 = inlined_call_operand.hbm [shape: bf16[128,128], index: 1, kind: input, shape index: {}]   ;;  %s1033_s2 = inlined_call_operand.vmem [shape: f32[3,128], index: 2, kind: input, shape index: {}]   ;;  %s1034_s3 = inlined_call_operand.hbm [shape: bf16[512,128], index: 3, kind: input, shape index: {}]   ;;  %s1035_s4 = inlined_call_operand.vmem [shape: f32[1,512], index: 4, kind: input, shape index: {}]   ;;  %s1036_s5 = inlined_call_operand.hbm [shape: bf16[16,512], index: 5, kind: output, shape index: {}]  }
   0x1   :  { %11 = vsyncpa [#allocation7], 0 }
   0x2   :  { %12 = vsyncpa [#allocation5], 0  ;;  %s915_s18 = smov [#allocation6]   ;;  %s916_s20 = smov [#allocation3]  }
   0x3   :  { %s30_s19 = sshll.u32 %s915_s18, 4  ;;  %s18_s21 = sshll.u32 %s916_s20, 4  ;;  %s31_s19 = int_to_ptr.vmem [resolvable:$true] %s30_s19  ;;  %s955_s21 = int_to_ptr.vmem [resolvable:$true] %s18_s21 }
   0x4   :  { %s821_s24 = scalar_lea.hbm %s1032_s1, 1024 }
   0x5   :  { %p822_p0 = scmp.ne.s32.totalorder %s1032_s1, %s821_s24  ;;  %p825_p1 = scmp.lt.u32.totalorder %s821_s24, %s1032_s1 }
   0x7   :  { %p827_p2 = pnand %p825_p1, %p822_p0 }
   0x9   :  { %830 = shalt.err (!%p827_p2)
}
   0xa   :  { %s831_s29 = scalar_lea.vmem %s31_s19, 1024  ;;  %p836_p4 = scmp.lt.s32.totalorder %s31_s19, %s31_s19 }
   0xb   :  { %p832_p3 = scmp.ne.s32.totalorder %s31_s19, %s831_s29  ;;  %p837_p5 = scmp.lt.s32.totalorder %s831_s29, %s831_s29 }
   0xd   :  { %p838_p6 = por %p837_p5, %p836_p4 }
   0xf   :  { %p839_p7 = pnand %p838_p6, %p832_p3 }
  0x11   :  { %842 = shalt.err (!%p839_p7)
}
  0x12   :  { %s917_s30 = smov 64   ;;  %s918_s6 = smov 4  }
  0x13   :  { %36 = dma.hbm_to_vmem [thread:$0]  %s1032_s1, 1024, %s31_s19, [#allocation7], %s917_s30, %s917_s30, %s918_s6  }
  0x14   :  { %s843_s11 = scalar_lea.hbm %s1031_s0, 128 }
  0x15   :  { %p844_p8 = scmp.ne.s32.totalorder %s1031_s0, %s843_s11  ;;  %p847_p9 = scmp.lt.u32.totalorder %s843_s11, %s1031_s0 }
  0x17   :  { %p849_p10 = pnand %p847_p9, %p844_p8 }
  0x19   :  { %852 = shalt.err (!%p849_p10)
}
  0x1a   :  { %s853_s16 = scalar_lea.vmem %s955_s21, 128  ;;  %p858_p12 = scmp.lt.s32.totalorder %s955_s21, %s955_s21 }
  0x1b   :  { %p854_p11 = scmp.ne.s32.totalorder %s955_s21, %s853_s16  ;;  %p859_p13 = scmp.lt.s32.totalorder %s853_s16, %s853_s16 }
  0x1d   :  { %p860_p0 = por %p859_p13, %p858_p12 }
  0x1f   :  { %p861_p1 = pnand %p860_p0, %p854_p11 }
  0x21   :  { %864 = shalt.err (!%p861_p1)
}
  0x22   :  { %24 = dma.hbm_to_vmem [thread:$0]  %s1031_s0, 128, %s955_s21, [#allocation4], %s917_s30, %s917_s30, %s918_s6  }
  0x23   :  { %s919_s18 = smov [#allocation8]   ;;  %s865_s23 = scalar_lea.hbm %s1034_s3, 4096 }
  0x24   :  { %s44_s19 = sshll.u32 %s919_s18, 4  ;;  %p866_p2 = scmp.ne.s32.totalorder %s1034_s3, %s865_s23  ;;  %s45_s19 = int_to_ptr.vmem [resolvable:$true] %s44_s19 }
  0x25   :  { %p869_p3 = scmp.lt.u32.totalorder %s865_s23, %s1034_s3 }
  0x27   :  { %p871_p4 = pnand %p869_p3, %p866_p2 }
  0x29   :  { %874 = shalt.err (!%p871_p4)
}
  0x2a   :  { %s875_s28 = scalar_lea.vmem %s45_s19, 4096  ;;  %p880_p6 = scmp.lt.s32.totalorder %s45_s19, %s45_s19 }
  0x2b   :  { %p876_p5 = scmp.ne.s32.totalorder %s45_s19, %s875_s28  ;;  %p881_p7 = scmp.lt.s32.totalorder %s875_s28, %s875_s28 }
  0x2d   :  { %p882_p8 = por %p881_p7, %p880_p6 }
  0x2f   :  { %p883_p9 = pnand %p882_p8, %p876_p5 }
  0x31   :  { %886 = shalt.err (!%p883_p9)
}
  0x32   :  { %50 = dma.hbm_to_vmem [thread:$0]  %s1034_s3, 4096, %s45_s19, [#allocation7], %s917_s30, %s917_s30, %s918_s6  }
  0x33   :  { %909 = dma.done.wait [#allocation4], 128  }
  0x34   :  { %910 = vsyncadd [#allocation4], 4294967168 }
  0x35   :  { %911 = dma.done.wait [#allocation7], 5120  }
  0x36   :  { %912 = vsyncadd [#allocation7], 4294962176  ;;  %v920_v0 = vmov 0.0   ;;  %vm921_vm0 = vmmov 0   ;;  %v772_v1 = vld [vmem:[#allocation6] sm:$0xff]   ;;  %v773_v2 = vld [vmem:[#allocation6 + $0x8] sm:$0xff]  }
  0x37   :  { %742 = vmatprep.subr.bf16.mxu0 %v920_v0  ;;  %758 = vmatprep.mubr.msk.bf16.mxu0 %vm921_vm0, %v920_v0  ;;  %v774_v3 = vld [vmem:[#allocation6 + $0x10] sm:$0xff]   ;;  %v775_v4 = vld [vmem:[#allocation6 + $0x18] sm:$0xff]   ;;  %v776_v5 = vld [vmem:[#allocation6 + $0x20] sm:$0xff]  }
  0x38   :  { %743 = vmatpush3.bf16.xpose.msra.mxu0 %v772_v1  ;;  %v777_v6 = vld [vmem:[#allocation6 + $0x28] sm:$0xff]   ;;  %v778_v7 = vld [vmem:[#allocation6 + $0x30] sm:$0xff]   ;;  %v779_v8 = vld [vmem:[#allocation6 + $0x38] sm:$0xff]  }
  0x39   :  { %744 = vmatprep.subr.bf16.mxu0 %v920_v0  ;;  %v780_v9 = vld [vmem:[#allocation3] sm:$0xff]   ;;  %v781_v27 = vld [vmem:[#allocation8 + $0x40] sm:$0xff]   ;;  %v785_v31 = vld [vmem:[#allocation8 + $0x48] sm:$0xff]  }
  0x3a   :  { %v645_v10 = vld [vmem:[%s1033_s2] ss:$0 sm:$0xff]  ;;  %v782_v28 = vld [vmem:[#allocation8 + $0xc0] sm:$0xff]   ;;  %v786_v32 = vld [vmem:[#allocation8 + $0xc8] sm:$0xff]   ;;  %706 = vmatprep.subr.bf16.mxu1 %v781_v27 }
  0x3b   :  { %v783_v29 = vld [vmem:[#allocation8] sm:$0xff]   ;;  %v787_v33 = vld [vmem:[#allocation8 + $0x8] sm:$0xff]   ;;  %v789_v35 = vld [vmem:[#allocation8 + $0x50] sm:$0xff]  }
  0x3c   :  { %v784_v30 = vld [vmem:[#allocation8 + $0x80] sm:$0xff]   ;;  %707 = vmatpush3.bf16.xpose.msra.mxu1 %v783_v29  ;;  %v788_v34 = vld [vmem:[#allocation8 + $0x88] sm:$0xff]   ;;  %v790_v36 = vld [vmem:[#allocation8 + $0xd0] sm:$0xff]  }
  0x3d   :  { %708 = vmatprep.subr.bf16.mxu1 %v785_v31  ;;  %v791_v37 = vld [vmem:[#allocation8 + $0x10] sm:$0xff]   ;;  %v793_v39 = vld [vmem:[#allocation8 + $0x58] sm:$0xff]   ;;  %v797_v43 = vld [vmem:[#allocation8 + $0x60] sm:$0xff]  }
  0x3e   :  { %v792_v38 = vld [vmem:[#allocation8 + $0x90] sm:$0xff]   ;;  %v794_v40 = vld [vmem:[#allocation8 + $0xd8] sm:$0xff]   ;;  %v798_v44 = vld [vmem:[#allocation8 + $0xe0] sm:$0xff]  }
  0x3f   :  { %v795_v41 = vld [vmem:[#allocation8 + $0x18] sm:$0xff]   ;;  %v799_v45 = vld [vmem:[#allocation8 + $0x20] sm:$0xff]   ;;  %v801_v55 = vld [vmem:[#allocation8 + $0x68] sm:$0xff]  }
  0x40   :  { %745 = vmatpush3.bf16.xpose.msra.mxu0 %v773_v2  ;;  %v796_v42 = vld [vmem:[#allocation8 + $0x98] sm:$0xff]   ;;  %v800_v46 = vld [vmem:[#allocation8 + $0xa0] sm:$0xff]   ;;  %v802_v56 = vld [vmem:[#allocation8 + $0xe8] sm:$0xff]  }
  0x41   :  { %746 = vmatprep.subr.bf16.mxu0 %v920_v0  ;;  %v803_v57 = vld [vmem:[#allocation8 + $0x28] sm:$0xff]   ;;  %v805_v59 = vld [vmem:[#allocation8 + $0x70] sm:$0xff]   ;;  %v809_v63 = vld [vmem:[#allocation8 + $0x78] sm:$0xff]  }
  0x42   :  { %v804_v58 = vld [vmem:[#allocation8 + $0xa8] sm:$0xff]   ;;  %v806_v60 = vld [vmem:[#allocation8 + $0xf0] sm:$0xff]   ;;  %v811_v1 = vld [vmem:[#allocation8 + $0x38] sm:$0xff]  }
  0x43   :  { %v807_v61 = vld [vmem:[#allocation8 + $0x30] sm:$0xff]   ;;  %v812_v2 = vld [vmem:[#allocation8 + $0xb8] sm:$0xff]  }
  0x44   :  { %709 = vmatpush3.bf16.xpose.msra.mxu1 %v787_v33  ;;  %v808_v62 = vld [vmem:[#allocation8 + $0xb0] sm:$0xff]  }
  0x45   :  { %710 = vmatprep.subr.bf16.mxu1 %v789_v35 }
  0x48   :  { %747 = vmatpush3.bf16.xpose.msra.mxu0 %v774_v3 }
  0x49   :  { %748 = vmatprep.subr.bf16.mxu0 %v920_v0 }
  0x4c   :  { %711 = vmatpush3.bf16.xpose.msra.mxu1 %v791_v37 }
  0x4d   :  { %712 = vmatprep.subr.bf16.mxu1 %v793_v39 }
  0x50   :  { %749 = vmatpush3.bf16.xpose.msra.mxu0 %v775_v4 }
  0x51   :  { %750 = vmatprep.subr.bf16.mxu0 %v920_v0 }
  0x54   :  { %713 = vmatpush3.bf16.xpose.msra.mxu1 %v795_v41 }
  0x55   :  { %714 = vmatprep.subr.bf16.mxu1 %v797_v43 }
  0x58   :  { %751 = vmatpush3.bf16.xpose.msra.mxu0 %v776_v5 }
  0x59   :  { %752 = vmatprep.subr.bf16.mxu0 %v920_v0 }
  0x5c   :  { %715 = vmatpush3.bf16.xpose.msra.mxu1 %v799_v45 }
  0x5d   :  { %716 = vmatprep.subr.bf16.mxu1 %v801_v55 }
  0x60   :  { %753 = vmatpush3.bf16.xpose.msra.mxu0 %v777_v6 }
  0x61   :  { %754 = vmatprep.subr.bf16.mxu0 %v920_v0 }
  0x64   :  { %717 = vmatpush3.bf16.xpose.msra.mxu1 %v803_v57 }
  0x65   :  { %718 = vmatprep.subr.bf16.mxu1 %v805_v59 }
  0x68   :  { %755 = vmatpush3.bf16.xpose.msra.mxu0 %v778_v7 }
  0x69   :  { %756 = vmatprep.subr.bf16.mxu0 %v920_v0  ;;  %v810_v0 = vld [vmem:[#allocation8 + $0xf8] sm:$0xff]  }
  0x6c   :  { %719 = vmatpush3.bf16.xpose.msra.mxu1 %v807_v61 }
  0x6d   :  { %720 = vmatprep.subr.bf16.mxu1 %v809_v63 }
  0x70   :  { %757 = vmatpush3.bf16.xpose.msra.mxu0 %v779_v8 }
  0x71   :  { %724 = vmatprep.subr.bf16.mxu0 %v782_v28 }
  0x74   :  { %721 = vmatpush3.bf16.xpose.msra.mxu1 %v811_v1 }
  0x77   :  { %759 = vmatmul.mubr.bf16.vlgmr.msra.gmra.mrb[0].mxu0 %v780_v9 }
  0x78   :  { %725 = vmatpush3.bf16.xpose.msra.mxu0 %v784_v30 }
  0x79   :  { %726 = vmatprep.subr.bf16.mxu0 %v786_v32 }
  0x80   :  { %727 = vmatpush3.bf16.xpose.msra.mxu0 %v788_v34 }
  0x81   :  { %728 = vmatprep.subr.bf16.mxu0 %v790_v36 }
  0x88   :  { %729 = vmatpush3.bf16.xpose.msra.mxu0 %v792_v38 }
  0x89   :  { %730 = vmatprep.subr.bf16.mxu0 %v794_v40 }
  0x90   :  { %731 = vmatpush3.bf16.xpose.msra.mxu0 %v796_v42 }
  0x91   :  { %732 = vmatprep.subr.bf16.mxu0 %v798_v44 }
  0x98   :  { %733 = vmatpush3.bf16.xpose.msra.mxu0 %v800_v46 }
  0x99   :  { %734 = vmatprep.subr.bf16.mxu0 %v802_v56 }
  0xa0   :  { %735 = vmatpush3.bf16.xpose.msra.mxu0 %v804_v58 }
  0xa1   :  { %736 = vmatprep.subr.bf16.mxu0 %v806_v60 }
  0xa8   :  { %737 = vmatpush3.bf16.xpose.msra.mxu0 %v808_v62 }
  0xa9   :  { %738 = vmatprep.subr.bf16.mxu0 %v810_v0 }
  0xb0   :  { %739 = vmatpush3.bf16.xpose.msra.mxu0 %v812_v2 }
 0x14a   :  { %v178_v11 = vpop.f32.mrb[0].mxu0 }
 0x14b   :  { %v179_v12 = vadd.f32 %v645_v10, %v178_v11  ;;  %v760_v13 = vpop.f32.mrb[1].mxu0  ;;  %v655_v11 = vld [vmem:[%s1033_s2 + $0x1] ss:$0 sm:$0xff] }
 0x14c   :  { %v181_v14 = vpop.f32.mrb[2].mxu0 }
 0x14d   :  { %v187_v15 = vmul.f32 0.70710677, %v179_v12  ;;  %v182_v16 = vadd.f32 %v645_v10, %v181_v14  ;;  %v761_v17 = vpop.f32.mrb[3].mxu0  ;;  %v185_v20 = vmul.f32 0.5, %v179_v12 }
 0x14f   :  { %813 = verf.f32 %v187_v15  ;;  %v188_v18 = vmul.f32 0.70710677, %v182_v16  ;;  %v186_v25 = vmul.f32 0.5, %v182_v16  ;;  %v656_v15 = vld [vmem:[%s1033_s2 + $0x2] ss:$0 sm:$0xff]  ;;  %s922_s2 = smov [#allocation9]  }
 0x150   :  { %s632_s11 = sshll.u32 %s922_s2, 4  ;;  %s633_s11 = int_to_ptr.vmem [resolvable:$true] %s632_s11 }
 0x151   :  { %815 = verf.f32 %v188_v18  ;;  %p892_p11 = scmp.lt.s32.totalorder %s633_s11, %s633_s11 }
 0x159   :  { %v814_v19 = vpop.eup %813 }
 0x15a   :  { %v191_v21 = vadd.f32 1.0, %v814_v19 }
 0x15b   :  { %v816_v22 = vpop.eup %815 }
 0x15c   :  { %v193_v23 = vmul.f32 %v191_v21, %v185_v20  ;;  %v192_v24 = vadd.f32 1.0, %v816_v22  ;;  %v301_v20 = vlaneseq }
 0x15e   :  { %195 = vadd.xlane.f32.xlu0 %v193_v23  ;;  %v194_v26 = vmul.f32 %v192_v24, %v186_v25  ;;  %v302_v21 = vshrl.u32 %v301_v20, 7  ;;  %v299_v24 = vld [vmem:[%s1035_s4] sm:$0xf]  ;;  %s887_s4 = scalar_lea.vmem %s633_s11, 512 }
 0x15f   :  { %p888_p10 = scmp.ne.s32.totalorder %s633_s11, %s887_s4  ;;  %p893_p12 = scmp.lt.s32.totalorder %s887_s4, %s887_s4 }
 0x160   :  { %v303_v22 = vsub.s32 0, %v302_v21  ;;  %v307_v25 = vsub.s32 1, %v302_v21 }
 0x161   :  { %p894_p13 = por %p893_p12, %p892_p11 }
 0x162   :  { %197 = vadd.xlane.f32.xlu0 %v194_v26  ;;  %v304_v27 = vrot.slane %v299_v24, %v303_v22  ;;  %v308_v29 = vrot.slane %v299_v24, %v307_v25 }
 0x163   :  { %p895_p0 = pnand %p894_p13, %p888_p10 }
 0x1eb   :  { %v196_v47 = vpop.xlane.xlu0 %195 }
 0x1ec   :  { %v200_v48 = vmul.f32 0.0078125, %v196_v47 }
 0x1ee   :  { %v202_v49 = vsub.f32 %v193_v23, %v200_v48  ;;  %v311_v23 = vsub.s32 2, %v302_v21 }
 0x1ef   :  { %v198_v50 = vpop.xlane.xlu0 %197 }
 0x1f0   :  { %v201_v51 = vmul.f32 0.0078125, %v198_v50  ;;  %v204_v52 = vmul.f32 %v202_v49, %v202_v49  ;;  %v312_v28 = vrot.slane %v299_v24, %v311_v23 }
 0x1f2   :  { %v203_v53 = vsub.f32 %v194_v26, %v201_v51  ;;  %206 = vadd.xlane.f32.xlu1 %v204_v52  ;;  %v315_v26 = vsub.s32 3, %v302_v21 }
 0x1f4   :  { %v205_v54 = vmul.f32 %v203_v53, %v203_v53  ;;  %v316_v30 = vrot.slane %v299_v24, %v315_v26 }
 0x1f6   :  { %208 = vadd.xlane.f32.xlu1 %v205_v54 }
 0x27f   :  { %v207_v3 = vpop.xlane.xlu1 %206 }
 0x280   :  { %v210_v4 = vmul.f32 0.0078125, %v207_v3 }
 0x282   :  { %v212_v5 = vadd.f32 1e-12, %v210_v4 }
 0x283   :  { %v209_v6 = vpop.xlane.xlu1 %208 }
 0x284   :  { %817 = vrsqrt.f32 %v212_v5  ;;  %v211_v7 = vmul.f32 0.0078125, %v209_v6 }
 0x286   :  { %v213_v8 = vadd.f32 1e-12, %v211_v7 }
 0x288   :  { %819 = vrsqrt.f32 %v213_v8 }
 0x28e   :  { %v818_v9 = vpop.eup %817 }
 0x28f   :  { %v216_v10 = vmul.f32 %v818_v9, %v202_v49 }
 0x291   :  { %v223_v14 = vmul.f32 %v655_v11, %v216_v10 }
 0x292   :  { %v820_v12 = vpop.eup %819 }
 0x293   :  { %v217_v13 = vmul.f32 %v820_v12, %v203_v53  ;;  %v230_v17 = vadd.f32 %v656_v15, %v223_v14 }
 0x295   :  { %v224_v16 = vmul.f32 %v655_v11, %v217_v13 }
 0x297   :  { %v231_v18 = vadd.f32 %v656_v15, %v224_v16 }
 0x299   :  { %v232_v19 = vpack.c.bf16 %v231_v18, %v230_v17 }
 0x29b   :  { %722 = vmatprep.mubr.bf16.mxu1 %v232_v19  ;;  %740 = vmatprep.mubr.bf16.mxu0 %v232_v19 }
 0x29c   :  { %723 = vmatmul.mubr.bf16.vlgmr.msra.gmra.mrb[0].mxu1 %v232_v19  ;;  %741 = vmatmul.mubr.bf16.vlgmr.msra.gmra.mrb[4].mxu0 %v232_v19 }
 0x36f   :  { %v547_v31 = vpop.f32.mrb[0].mxu1  ;;  %v590_v32 = vpop.f32.mrb[4].mxu0 }
 0x370   :  { %v548_v33 = vadd.f32 %v547_v31, %v304_v27  ;;  %v591_v34 = vadd.f32 %v590_v32, %v312_v28  ;;  %v549_v35 = vpop.f32.mrb[1].mxu1  ;;  %v592_v36 = vpop.f32.mrb[5].mxu0 }
 0x371   :  { %v550_v37 = vadd.f32 %v549_v35, %v308_v29  ;;  %v593_v38 = vadd.f32 %v592_v36, %v316_v30  ;;  %v551_v39 = vpop.f32.mrb[2].mxu1  ;;  %v594_v40 = vpop.f32.mrb[6].mxu0 }
 0x372   :  { %v552_v41 = vadd.f32 %v551_v39, %v304_v27  ;;  %v595_v42 = vadd.f32 %v594_v40, %v312_v28  ;;  %v553_v43 = vpop.f32.mrb[3].mxu1  ;;  %v596_v44 = vpop.f32.mrb[7].mxu0 }
 0x373   :  { %v693_v45 = vpack.c.bf16 %v550_v37, %v548_v33  ;;  %v694_v46 = vpack.c.bf16 %v593_v38, %v591_v34  ;;  %v554_v47 = vadd.f32 %v553_v43, %v308_v29  ;;  %v597_v48 = vadd.f32 %v596_v44, %v316_v30 }
 0x375   :  { %623 = vst [vmem:[#allocation9] sm:$0xff] %v693_v45  ;;  %624 = vst [vmem:[#allocation9 + $0x8] sm:$0xff] %v694_v46  ;;  %v695_v49 = vpack.c.bf16 %v554_v47, %v552_v41  ;;  %v696_v50 = vpack.c.bf16 %v597_v48, %v595_v42 }
 0x377   :  { %625 = vst [vmem:[#allocation9 + $0x10] sm:$0xff] %v695_v49  ;;  %626 = vst [vmem:[#allocation9 + $0x18] sm:$0xff] %v696_v50 }
 0x378   :  { %898 = shalt.err (!%p895_p0)
}
 0x379   :  { %s899_s14 = scalar_lea.hbm %s1036_s5, 512 }
 0x37a   :  { %p900_p1 = scmp.ne.s32.totalorder %s1036_s5, %s899_s14  ;;  %p903_p2 = scmp.lt.u32.totalorder %s899_s14, %s1036_s5 }
 0x37c   :  { %p905_p3 = pnand %p903_p2, %p900_p1 }
 0x37e   :  { %908 = shalt.err (!%p905_p3)
}
 0x37f   :  { %s923_s18 = smov 256   ;;  %s924_s19 = smov 16  }
 0x380   :  { %638 = dma.vmem_to_hbm [thread:$0]  %s633_s11, 512, %s1036_s5, [#allocation5], %s923_s18, %s923_s18, %s924_s19  }
 0x381   :  { %913 = dma.done.wait [#allocation5], 512  }
 0x382   :  { %914 = vsyncadd [#allocation5], 4294966784 }
 0x383   :  { %642 = vsyncpa [#allocation4], 1 }
 0x384   :  { %643 = vsyncpa [#allocation7], 1 }
 0x385   :  { %644 = vsyncpa [#allocation5], 1 }

</bundles_post_ra>
